<compile_context>
chip_gen: v7x
topology: tpu7x:2x2x1
jax: 0.10.0
libtpu: 0.0.40
codegen_flags: <defaults>
</compile_context>

<pallas_src>
import functools

import jax
import jax.numpy as jnp
from jax.experimental import pallas as pl
from jax.experimental.pallas import tpu as pltpu


def _ln3d_kernel(x_ref, w_ref, b_ref, o_ref, *, eps: float):
    # x_ref: (1, C, TS)   w_ref/b_ref: (C, 1)
    x = x_ref[...].astype(jnp.float32)
    u = jnp.mean(x, axis=1, keepdims=True)            # per-lane mean over channels (XLU slot)
    d = x - u
    s = jnp.mean(d * d, axis=1, keepdims=True)        # biased variance over channels
    xn = d * jax.lax.rsqrt(s + eps)                   # rsqrt on EUP slot (free vs HBM bound)
    w = w_ref[...][None, :, :]                        # (1, C, 1)
    b = b_ref[...][None, :, :]
    o_ref[...] = (w * xn + b).astype(o_ref.dtype)


def _round_up(x, m):
    return ((x + m - 1) // m) * m


def _round_down_128(x):
    return max(128, (x // 128) * 128)


def _choose_tile(S, C, N, itemsize):
    """Pick a lane tile (multiple of 128) sized from the per-core VMEM budget."""
    S128 = _round_up(S, 128)
    try:
        vmem_cap = int(pltpu.get_tpu_info().vmem_capacity_bytes)
    except Exception:  # conservative default = v7x per-TC VMEM
        vmem_cap = 64 * 1024 * 1024
    # Budget per pipeline step against per-TensorCore VMEM; clamping to 64 MiB means a
    # per-chip capacity report on a 2-TC part (v7x) cannot double-book across cores.
    per_core_cap = min(vmem_cap, 64 * 1024 * 1024)
    budget = per_core_cap // 3
    # Per-step footprint per lane of tile:
    #   double-buffered in+out blocks : 4 * C * itemsize
    #   f32 intermediates (x, d, xn, pre-cast out): ~4 * C * 4 bytes
    per_lane = C * (4 * itemsize + 16)
    cap = _round_down_128(budget // max(per_lane, 1))
    # Streaming kernels hit ~85% of the HBM roofline by 512-1024 lanes; >2048 buys <1-2%.
    tile = max(128, min(cap, 2048, S128))
    # Keep enough grid points for megacore sharding + pipeline prefetch:
    # prefer >= 8 total steps (>= 2 per v7x core), require >= 4, floor the tile at 128.
    while N * pl.cdiv(S, tile) < 8 and tile > 512:
        tile = max(512, _round_down_128(tile // 2))
    while N * pl.cdiv(S, tile) < 4 and tile > 128:
        tile = _round_down_128(tile // 2)
    return tile, per_core_cap


def layer_norm_3d(x, weight, bias, *, eps: float = 1e-6):
    """x: (N, C, D, H, W); weight, bias: (C,). Returns (N, C, D, H, W)."""
    N, C, D, H, W = x.shape
    S = D * H * W
    itemsize = jnp.dtype(x.dtype).itemsize
    tile_s, per_core_cap = _choose_tile(S, C, N, itemsize)

    x2 = x.reshape(N, C, S)          # no padding: ragged last S-block is masked by Pallas
    w2 = weight.reshape(C, 1)
    b2 = bias.reshape(C, 1)

    grid = (N, pl.cdiv(S, tile_s))

    block_bytes = C * tile_s * itemsize
    temp_bytes = 4 * C * tile_s * 4  # f32 intermediates inside the kernel body
    vmem_limit = int(max(16 * 1024 * 1024,
                         min(4 * block_bytes + temp_bytes + (8 << 20), per_core_cap)))

    w_bytes = jnp.dtype(weight.dtype).itemsize
    cost = pl.CostEstimate(
        flops=7 * N * C * S,
        transcendentals=N * S,
        bytes_accessed=2 * N * C * S * itemsize + 2 * C * w_bytes,
    )

    out = pl.pallas_call(
        functools.partial(_ln3d_kernel, eps=eps),
        out_shape=jax.ShapeDtypeStruct((N, C, S), x.dtype),
        grid=grid,
        in_specs=[
            pl.BlockSpec((1, C, tile_s), lambda n, s: (n, 0, s)),
            pl.BlockSpec((C, 1), lambda n, s: (0, 0)),
            pl.BlockSpec((C, 1), lambda n, s: (0, 0)),
        ],
        out_specs=pl.BlockSpec((1, C, tile_s), lambda n, s: (n, 0, s)),
        compiler_params=pltpu.CompilerParams(
            dimension_semantics=("parallel", "parallel"),
            vmem_limit_bytes=vmem_limit,
        ),
        cost_estimate=cost,
    )(x2, w2, b2)

    return out.reshape(N, C, D, H, W)


def _reference(x, weight, bias, eps=1e-6):
    xf = x.astype(jnp.float32)
    u = jnp.mean(xf, axis=1, keepdims=True)
    s = jnp.mean((xf - u) ** 2, axis=1, keepdims=True)
    xn = (xf - u) / jnp.sqrt(s + eps)
    return (weight[None, :, None, None, None] * xn
            + bias[None, :, None, None, None]).astype(x.dtype)


if __name__ == "__main__":
    key = jax.random.PRNGKey(0)
    N, C, D, H, W = 2, 4, 8, 8, 8
    x = jax.random.normal(key, (N, C, D, H, W), dtype=jnp.float32)

    # Deterministic parameter init matching nn.Parameter(torch.ones/zeros(C)).
    weight = jnp.ones((C,), dtype=jnp.float32)
    bias = jnp.zeros((C,), dtype=jnp.float32)

    out = layer_norm_3d(x, weight, bias, eps=1e-6)
    jax.block_until_ready(out)

    ref = _reference(x, weight, bias, eps=1e-6)
    assert out.shape == (N, C, D, H, W)
    assert jnp.allclose(out, ref, atol=1e-5, rtol=1e-5)
    print("KERNEL_OK")
</pallas_src>

<mosaic_0001>
module attributes {stable_mosaic.version = 11 : i64} {
  func.func @_ln3d_kernel(%arg0: i32, %arg1: i32, %arg2: memref<1x4x256xf32, #tpu.memory_space<vmem>>, %arg3: memref<4x1xf32, #tpu.memory_space<vmem>>, %arg4: memref<4x1xf32, #tpu.memory_space<vmem>>, %arg5: memref<1x4x256xf32, #tpu.memory_space<vmem>>) attributes {dimension_semantics = [#tpu.dimension_semantics<parallel>, #tpu.dimension_semantics<parallel>], iteration_bounds = array<i64: 2, 2>, scalar_prefetch = 0 : i64, scratch_operands = 0 : i64, tpu.core_type = #tpu.core_type<tc>, window_params = [{transform_indices = @transform_0, window_bounds = array<i64: 1, 4, 256>}, {pipeline_mode = #tpu.pipeline_mode<synchronous>, transform_indices = @transform_1, window_bounds = array<i64: 4, 1>}, {pipeline_mode = #tpu.pipeline_mode<synchronous>, transform_indices = @transform_2, window_bounds = array<i64: 4, 1>}, {transform_indices = @transform_3, window_bounds = array<i64: 1, 4, 256>}]} {
    %c0 = arith.constant 0 : index
    %c0_0 = arith.constant 0 : index
    %c0_1 = arith.constant 0 : index
    %0 = vector.load %arg2[%c0, %c0_0, %c0_1] : memref<1x4x256xf32, #tpu.memory_space<vmem>>, vector<1x4x256xf32>
    %cst = arith.constant dense<0.000000e+00> : vector<1x256xf32>
    %1 = vector.multi_reduction <add>, %0, %cst [1] : vector<1x4x256xf32> to vector<1x256xf32>
    %2 = vector.shape_cast %1 : vector<1x256xf32> to vector<1x1x256xf32>
    %cst_2 = arith.constant 4.000000e+00 : f32
    %3 = vector.broadcast %cst_2 : f32 to vector<1x1x256xf32>
    %4 = arith.divf %2, %3 : vector<1x1x256xf32>
    %5 = vector.broadcast %4 : vector<1x1x256xf32> to vector<1x4x256xf32>
    %6 = arith.subf %0, %5 : vector<1x4x256xf32>
    %7 = arith.mulf %6, %6 : vector<1x4x256xf32>
    %cst_3 = arith.constant dense<0.000000e+00> : vector<1x256xf32>
    %8 = vector.multi_reduction <add>, %7, %cst_3 [1] : vector<1x4x256xf32> to vector<1x256xf32>
    %9 = vector.shape_cast %8 : vector<1x256xf32> to vector<1x1x256xf32>
    %cst_4 = arith.constant 4.000000e+00 : f32
    %10 = vector.broadcast %cst_4 : f32 to vector<1x1x256xf32>
    %11 = arith.divf %9, %10 : vector<1x1x256xf32>
    %cst_5 = arith.constant 9.99999997E-7 : f32
    %12 = vector.broadcast %cst_5 : f32 to vector<1x1x256xf32>
    %13 = arith.addf %11, %12 : vector<1x1x256xf32>
    %14 = math.rsqrt %13 : vector<1x1x256xf32>
    %15 = vector.broadcast %14 : vector<1x1x256xf32> to vector<1x4x256xf32>
    %16 = arith.mulf %6, %15 : vector<1x4x256xf32>
    %c0_6 = arith.constant 0 : index
    %c0_7 = arith.constant 0 : index
    %17 = vector.load %arg3[%c0_6, %c0_7] : memref<4x1xf32, #tpu.memory_space<vmem>>, vector<4x1xf32>
    %18 = vector.shape_cast %17 : vector<4x1xf32> to vector<1x4x1xf32>
    %c0_8 = arith.constant 0 : index
    %c0_9 = arith.constant 0 : index
    %19 = vector.load %arg4[%c0_8, %c0_9] : memref<4x1xf32, #tpu.memory_space<vmem>>, vector<4x1xf32>
    %20 = vector.shape_cast %19 : vector<4x1xf32> to vector<1x4x1xf32>
    %21 = vector.broadcast %18 : vector<1x4x1xf32> to vector<1x4x256xf32>
    %22 = arith.mulf %21, %16 : vector<1x4x256xf32>
    %23 = vector.broadcast %20 : vector<1x4x1xf32> to vector<1x4x256xf32>
    %24 = arith.addf %22, %23 : vector<1x4x256xf32>
    %c0_10 = arith.constant 0 : index
    %c0_11 = arith.constant 0 : index
    %c0_12 = arith.constant 0 : index
    %25 = vector.load %arg5[%c0_10, %c0_11, %c0_12] : memref<1x4x256xf32, #tpu.memory_space<vmem>>, vector<1x4x256xf32>
    tpu.vector_store %arg5[%c0_10, %c0_11, %c0_12], %24 {strides = array<i32>} : memref<1x4x256xf32, #tpu.memory_space<vmem>>, vector<1x4x256xf32>,
    return
  }
  func.func @transform_0(%arg0: i32, %arg1: i32) -> (i32, i32, i32) {
    %c0_i32 = arith.constant 0 : i32
    %c0_i32_0 = arith.constant 0 : i32
    return %arg0, %c0_i32, %arg1 : i32, i32, i32
  }
  func.func @transform_1(%arg0: i32, %arg1: i32) -> (i32, i32) {
    %c0_i32 = arith.constant 0 : i32
    %c0_i32_0 = arith.constant 0 : i32
    %c0_i32_1 = arith.constant 0 : i32
    return %c0_i32, %c0_i32_0 : i32, i32
  }
  func.func @transform_2(%arg0: i32, %arg1: i32) -> (i32, i32) {
    %c0_i32 = arith.constant 0 : i32
    %c0_i32_0 = arith.constant 0 : i32
    %c0_i32_1 = arith.constant 0 : i32
    return %c0_i32, %c0_i32_0 : i32, i32
  }
  func.func @transform_3(%arg0: i32, %arg1: i32) -> (i32, i32, i32) {
    %c0_i32 = arith.constant 0 : i32
    %c0_i32_0 = arith.constant 0 : i32
    return %arg0, %c0_i32, %arg1 : i32, i32, i32
  }
}

</mosaic_0001>

<bundles_post_ra>
// kernel: tpu_custom_call.1
= control target key start
LH: loop header
LB: loop body
LE: loop exit
PB: predicated region body
PF: predicated region fallthrough
CT: control target
= control target key end

     0   :  { %8 = vsyncpa [#allocation3], 0  ;;  %s854_s0 = inlined_call_operand.hbm [shape: f32[2,4,512], index: 0, kind: input, shape index: {}]   ;;  %s855_s1 = inlined_call_operand.vmem [shape: f32[4,1], index: 1, kind: input, shape index: {}]   ;;  %s856_s2 = inlined_call_operand.vmem [shape: f32[4,1], index: 2, kind: input, shape index: {}]   ;;  %s857_s3 = inlined_call_operand.hbm [shape: f32[2,4,512], index: 3, kind: output, shape index: {}]  }
   0x1   :  { %10 = vsyncpa [#allocation3 + $0x1], 0 }
   0x2   :  { %11 = vsyncpa [#allocation4], 0 }
   0x3   :  { %13 = vsyncpa [#allocation4 + $0x1], 0  ;;  %s646_s12 = smov 0   ;;  %s648_s13 = smov 0  }
   0x4   :  { %s650_s14 = smov 0   ;;  %s652_s15 = smov 0  }
   0x5   :  { %s654_s16 = smov 0   ;;  %s656_s17 = smov 0  }
   0x6   :  { %s658_s18 = smov 0   ;;  %s660_s19 = smov 0  }
   0x7 LB: > { %s391_s20 = sadd.s32 4294967295, %s621_s19   ;;  %s392_s21 = sadd.s32 4294967294, %s621_s19   ;;  %s621_s19 = sphi %s660_s19, %s19_s19   ;;  %s617_s18 = sphi %s658_s18, %s874_s18   ;;  %s613_s17 = sphi %s656_s17, %s873_s17   ;;  %s609_s16 = sphi %s654_s16, %s872_s16   ;;  %s605_s15 = sphi %s652_s15, %s871_s15   ;;  %s601_s14 = sphi %s650_s14, %s870_s14   ;;  %s597_s13 = sphi %s648_s13, %s869_s13   ;;  %s593_s12 = sphi %s646_s12, %s868_s12  }
   0x8   : > { %s28_s22 = sadd.s32 1, %s613_s17  ;;  %s31_s23 = sadd.s32 1, %s617_s18 }
   0x9   : > { %p29_p0 = scmp.ge.s32.totalorder %s28_s22, 2  ;;  %s40_s24 = sadd.s32 1, %s601_s14 }
   0xa   : > { %p47_p1 = scmp.ne.s32.totalorder %s601_s14, %s597_s13  ;;  %p48_p2 = scmp.eq.s32.totalorder %s621_s19, 0 }
   0xb   : > { %s876_s22 = smov (%p29_p0, %s28_s22), 0  ;;  %s878_s23 = smov (!%p29_p0, %s31_s23), %s617_s18 }
   0xc   : > { %s36_s25 = ssub.s32 %s613_s17, %s876_s22  ;;  %p699_p3 = por %p48_p2, %p47_p1 }
   0xd   : > { %p33_p4 = scmp.ge.s32.totalorder %s878_s23, 2  ;;  %p53_p5 = scmp.ne.s32.totalorder %s597_s13, %s593_s12 }
   0xe   : > { %p54_p6 = scmp.eq.s32.totalorder %s391_s20, 0  ;;  %p121_p7 = scmp.eq.s32.totalorder %s391_s20, 3 }
   0xf   : > { %s880_s23 = smov (%p33_p4, %s878_s23), 0  ;;  %p127_p10 = scmp.eq.s32.totalorder %s392_s21, 3 }
  0x10   : > { %p707_p8 = por %p54_p6, %p53_p5  ;;  %p711_p9 = por %p121_p7, %p47_p1 }
  0x11   : > { %s35_s29 = ssub.s32 %s617_s18, %s880_s23  ;;  %p717_p12 = por %p127_p10, %p53_p5 }
  0x12   : > { %s861_s28 = scalar_select %p711_p9, 1, 0 }
  0x13   : > { %s37_s30 = sor.u32 %s36_s25, %s35_s29  ;;  %p420_p13 = scmp.lt.s32.totalorder %s621_s19, 4 }
  0x14   : > { %p38_p11 = scmp.eq.s32.totalorder %s37_s30, 0  ;;  %s153_s5 = sand.u32 1, %s601_s14  }
  0x15   : > { %s862_s4 = scalar_select %p717_p12, 1, 0 }
  0x16   : > { %s724_s6 = scalar_select %p38_p11, %s601_s14, %s40_s24  }
  0x17   : > { %s395_s7 = sshll.u32 %s153_s5, 3  ;;  %s396_s8 = sshll.u32 %s613_s17, 1 }
  0x18   : > { %s397_s9 = sshll.u32 %s617_s18, 2  ;;  %s157_s10 = scalar_lea.vmem [#allocation2], %s395_s7 }
  0x19   : > { %s167_s11 = sshll.u32 %s157_s10, 4  ;;  %s163_s20 = sadd.s32 %s397_s9, %s396_s8  ;;  %s728_s11 = int_to_ptr.vmem [resolvable:$true] %s167_s11 }
  0x1a   : > { %s398_s21 = sshll.u32 %s163_s20, 6  ;;  %p732_p0 = pnand %p420_p13, %p699_p3 }
  0x1b   : > { %s739_s24 = scalar_lea.hbm %s854_s0, %s398_s21  ;;  %s154_s7 = scalar_lea.sflag [#allocation3], %s153_s5 }
  0x1c   : > { %s493_s8 = scalar_lea.hbm %s739_s24, 128  ;;  %p495_p3 = pneg %p732_p0 }
  0x1d   : > { %p494_p4 = scmp.ne.s32.totalorder %s739_s24, %s493_s8  ;;  %s498_s10 = scalar_lea.hbm %s854_s0, 512 }
  0x1e   : > { %p499_p7 = scmp.lt.u32.totalorder %s739_s24, %s854_s0  ;;  %p500_p10 = scmp.lt.u32.totalorder %s498_s10, %s493_s8 }
  0x1f   : > { %p496_p5 = pnand %p495_p3, %p494_p4  ;;  %p502_p13 = scmp.lt.u32.totalorder %s493_s8, %s739_s24 }
  0x20   : > { %p501_p11 = por %p500_p10, %p499_p7 }
  0x21   : > { %p497_p6 = pneg %p496_p5 }
  0x22   : > { %p503_p1 = por %p502_p13, %p501_p11 }
  0x24   : > { %p504_p2 = pnand %p503_p1, %p497_p6 }
  0x26   : > { %507 = shalt.err (!%p504_p2)
}
  0x27   : > { %s508_s5 = scalar_lea.vmem %s728_s11, 128  ;;  %s623_s29 = smov [#allocation2]  }
  0x28   : > { %p509_p4 = scmp.ne.s32.totalorder %s728_s11, %s508_s5  ;;  %s513_s30 = sshll.u32 %s623_s29, 4  ;;  %s514_s30 = int_to_ptr.vmem [resolvable:$false] %s513_s30 }
  0x29   : > { %s515_s26 = scalar_lea.vmem %s514_s30, 256  ;;  %p516_p9 = scmp.lt.s32.totalorder %s728_s11, %s514_s30 }
  0x2a   : > { %p511_p5 = pnand %p509_p4, %p495_p3  ;;  %p517_p7 = scmp.lt.s32.totalorder %s515_s26, %s508_s5 }
  0x2c   : > { %p512_p12 = pneg %p511_p5  ;;  %p518_p10 = por %p517_p7, %p516_p9 }
  0x2e   : > { %p519_p11 = pnand %p518_p10, %p512_p12 }
  0x30   : > { %522 = shalt.err (!%p519_p11)
}
  0x31   : > { %415 = dma.hbm_to_vmem [thread:$0]  (!%p732_p0), %s739_s24, 128, %s728_s11, %s154_s7  }
  0x32   : > { %p864_p1 = scmp.lt.s32.totalorder %s621_s19, 5  ;;  %p865_p2 = scmp.ge.s32.totalorder %s621_s19, 1 }
  0x34   : > { %p173_p3 = pnand %p865_p2, %p864_p1 }
  0x35   : > { %s773_s8 = sand.u32 (!%p173_p3), 1, %s597_s13  }
  0x36   : > { %176 = sbr.rel (%p173_p3) target bundleno = 214 (0xd6), region = 32  ;;  %s400_s9 = sshll.u32 (!%p173_p3), %s773_s8, 3 }
  0x37   : > { %s179_s10 = scalar_lea.sflag (!%p173_p3), [#allocation3], %s773_s8  ;;  %s182_s25 = scalar_lea.vmem (!%p173_p3), [#allocation2], %s400_s9 }
  0x3d   : > { %584 = dma.done.wait (%p707_p8), %s179_s10, 128  }
  0x3e   : > { %586 = vsyncadd (%p707_p8), %s179_s10, 4294967168  ;;  %v624_v0 = vmov 0   ;;  %v263_v1 = vld [vmem:[%s855_s1] sm:$0xf]  ;;  %vm211_vm0 = vcmask 1043456   ;;  %s403_s27 = sshll.u32 %s605_s15, 1 }
  0x3f   : > { %487 = vset.pattern.permute.xlu0 %v624_v0  ;;  %v264_v2 = vld [vmem:[%s856_s2] sm:$0xf]  ;;  %s404_s21 = sshll.u32 %s609_s16, 2  ;;  %s204_s30 = scalar_lea.vmem [#allocation5], %s400_s9 }
  0x40   : > { %267 = vperm.xlu0 %487, %v263_v1   ;;  %v207_v3 = vld [vmem:[%s182_s25] sm:$0xff]  ;;  %s300_s5 = sadd.s32 %s404_s21, %s403_s27  ;;  %s304_s26 = sshll.u32 %s204_s30, 4  ;;  %s802_s26 = int_to_ptr.vmem [resolvable:$true] %s304_s26 }
  0x41   : > { %v209_v4 = vcombine.high %v207_v3, %v207_v3  ;;  %v212_v5 = vsel %vm211_vm0, %v207_v3, 0.0  ;;  %s405_s29 = sshll.u32 %s300_s5, 6  ;;  %s288_s16 = scalar_lea.sflag [#allocation4], %s773_s8 }
  0x42   : > { %v213_v7 = vrot.slane %v212_v5, 4  ;;  %s800_s15 = scalar_lea.hbm %s857_s3, %s405_s29  ;;  %s523_s11 = scalar_lea.vmem %s802_s26, 128 }
  0x43   : > { %v219_v6 = vsel %vm211_vm0, %v209_v4, 0.0  ;;  %p524_p8 = scmp.ne.s32.totalorder %s802_s26, %s523_s11  ;;  %p866_p9 = scmp.ne.s32.totalorder %s861_s28, 0 }
  0x44   : > { %277 = vperm.xlu0 %487, %v264_v2   ;;  %v220_v8 = vrot.slane %v219_v6, 4  ;;  %v214_v9 = vadd.f32 %v213_v7, %v212_v5  ;;  %s625_s9 = smov [#allocation5]  }
  0x45   : > { %p525_p12 = pnand %p524_p8, %p866_p9  ;;  %s527_s24 = sshll.u32 %s625_s9, 4  ;;  %s528_s24 = int_to_ptr.vmem [resolvable:$false] %s527_s24 }
  0x46   : > { %v221_v10 = vadd.f32 %v220_v8, %v219_v6  ;;  %v215_v11 = vrot.slane %v214_v9, 2  ;;  %s529_s7 = scalar_lea.vmem %s528_s24, 256  ;;  %p530_p6 = scmp.lt.s32.totalorder %s802_s26, %s528_s24 }
  0x47   : > { %p526_p0 = pneg %p525_p12  ;;  %p531_p13 = scmp.lt.s32.totalorder %s529_s7, %s523_s11 }
  0x48   : > { %v222_v12 = vrot.slane %v221_v10, 2  ;;  %v216_v13 = vadd.f32 %v215_v11, %v214_v9 }
  0x49   : > { %p532_p4 = por %p531_p13, %p530_p6 }
  0x4a   : > { %v223_v14 = vadd.f32 %v222_v12, %v221_v10  ;;  %v217_v15 = vrot.slane %v216_v13, 1 }
  0x4b   : > { %p533_p5 = pnand %p532_p4, %p526_p0 }
  0x4c   : > { %v224_v16 = vrot.slane %v223_v14, 1  ;;  %v218_v17 = vadd.f32 %v217_v15, %v216_v13 }
  0x4e   : > { %v225_v18 = vadd.f32 %v224_v16, %v223_v14  ;;  %v227_v19 = vmul.f32 0.25, %v218_v17 }
  0x50   : > { %v228_v20 = vmul.f32 0.25, %v225_v18 }
  0x52   : > { %v231_v21 = vcombine.low %v227_v19, %v228_v20 }
  0x54   : > { %v233_v22 = vsub.f32 %v207_v3, %v231_v21 }
  0x56   : > { %v234_v23 = vmul.f32 %v233_v22, %v233_v22 }
  0x58   : > { %v236_v24 = vcombine.high %v234_v23, %v234_v23  ;;  %v238_v25 = vsel %vm211_vm0, %v234_v23, 0.0 }
  0x59   : > { %v239_v27 = vrot.slane %v238_v25, 4 }
  0x5a   : > { %v245_v26 = vsel %vm211_vm0, %v236_v24, 0.0 }
  0x5b   : > { %v246_v28 = vrot.slane %v245_v26, 4  ;;  %v240_v29 = vadd.f32 %v239_v27, %v238_v25 }
  0x5d   : > { %v247_v30 = vadd.f32 %v246_v28, %v245_v26  ;;  %v241_v31 = vrot.slane %v240_v29, 2 }
  0x5f   : > { %v248_v32 = vrot.slane %v247_v30, 2  ;;  %v242_v33 = vadd.f32 %v241_v31, %v240_v29 }
  0x61   : > { %v249_v34 = vadd.f32 %v248_v32, %v247_v30  ;;  %v243_v35 = vrot.slane %v242_v33, 1 }
  0x63   : > { %v250_v36 = vrot.slane %v249_v34, 1  ;;  %v244_v37 = vadd.f32 %v243_v35, %v242_v33 }
  0x65   : > { %v251_v38 = vadd.f32 %v250_v36, %v249_v34  ;;  %v252_v39 = vmul.f32 0.25, %v244_v37 }
  0x67   : > { %v253_v40 = vmul.f32 0.25, %v251_v38  ;;  %v254_v41 = vadd.f32 1e-06, %v252_v39 }
  0x69   : > { %v255_v42 = vadd.f32 1e-06, %v253_v40  ;;  %489 = vrsqrt.f32 %v254_v41 }
  0x6b   : > { %491 = vrsqrt.f32 %v255_v42 }
  0x73   : > { %v490_v43 = vpop.eup %489 }
  0x75   : > { %v492_v44 = vpop.eup %491 }
  0x76   : > { %v260_v45 = vcombine.low %v490_v43, %v492_v44 }
  0x78   : > { %v262_v46 = vmul.f32 %v260_v45, %v233_v22 }
  0x7a   : > { %v271_v47 = vcombine.high %v262_v46, %v262_v46 }
  0xbf   : > { %v268_v48 = vpop.permute.xlu0 %267 }
  0xc0   : > { %v273_v49 = vmul.f32 %v268_v48, %v262_v46  ;;  %v274_v50 = vmul.f32 %v271_v47, %v268_v48 }
  0xc3   : > { %v278_v51 = vpop.permute.xlu0 %277 }
  0xc4   : > { %v280_v52 = vadd.f32 %v278_v51, %v273_v49  ;;  %v281_v53 = vadd.f32 %v278_v51, %v274_v50 }
  0xc6   : > { %v284_v54 = vcombine.low %v280_v52, %v281_v53 }
  0xc8   : > { %286 = vst [vmem:[%s204_s30] sm:$0xff] %v284_v54 }
  0xc9   : > { %536 = shalt.err (!%p533_p5)
}
  0xca   : > { %s537_s8 = scalar_lea.hbm %s800_s15, 128  ;;  %s541_s21 = scalar_lea.hbm %s857_s3, 512 }
  0xcb   : > { %p538_p7 = scmp.ne.s32.totalorder %s800_s15, %s537_s8  ;;  %p542_p1 = scmp.lt.u32.totalorder %s800_s15, %s857_s3 }
  0xcc   : > { %p543_p2 = scmp.lt.u32.totalorder %s541_s21, %s537_s8  ;;  %p545_p8 = scmp.lt.u32.totalorder %s537_s8, %s800_s15 }
  0xcd   : > { %p539_p10 = pnand %p538_p7, %p866_p9 }
  0xce   : > { %p544_p3 = por %p543_p2, %p542_p1 }
  0xcf   : > { %p540_p11 = pneg %p539_p10 }
  0xd0   : > { %p546_p12 = por %p545_p8, %p544_p3 }
  0xd2   : > { %p547_p0 = pnand %p546_p12, %p540_p11 }
  0xd4   : > { %550 = shalt.err (!%p547_p0)
}
  0xd5   : > { %410 = dma.vmem_to_hbm [thread:$0]  (%p866_p9), %s802_s26, 128, %s800_s15, %s288_s16  }
  0xd6 PF: > { %p421_p6 = scmp.ge.s32.totalorder %s621_s19, 2  ;;  %s316_s30 = sand.u32 1, %s593_s12  }
  0xd7   : > { %p867_p13 = scmp.ne.s32.totalorder %s862_s4, 0  ;;  %s317_s10 = scalar_lea.sflag [#allocation4], %s316_s30 }
  0xd9   : > { %p417_p4 = pnand %p421_p6, %p867_p13 }
  0xdb   : > { %588 = dma.done.wait (!%p417_p4), %s317_s10, 128  }
  0xdc   : > { %590 = vsyncadd (!%p417_p4), %s317_s10, 4294967168  ;;  %s19_s19 = sadd.s32 1, %s621_s19   ;;  %s868_s12 = smov %s597_s13 }
  0xdd   : > { %p16_p5 = scmp.ge.s32.totalorder %s19_s19, 6   ;;  %s869_s13 = smov %s601_s14 }
  0xde   : > { %s870_s14 = smov %s724_s6  ;;  %s871_s15 = smov %s613_s17 }
  0xdf   : > { %s872_s16 = smov %s617_s18  ;;  %s873_s17 = smov %s876_s22 }
  0xe0   : > { %s874_s18 = smov %s880_s23  ;;  %18 = sbr.rel (!%p16_p5) target bundleno = 7 (0x7), region = 77 }
  0xe7   :  { %322 = vsyncpa [#allocation3], 1 }
  0xe8   :  { %324 = vsyncpa [#allocation3 + $0x1], 1 }
  0xe9   :  { %325 = vsyncpa [#allocation4], 1 }
  0xea   :  { %327 = vsyncpa [#allocation4 + $0x1], 1 }

</bundles_post_ra>
